<compile_context>
chip_gen: v7x
topology: tpu7x:2x2x1
jax: 0.10.0
libtpu: 0.0.40
codegen_flags: <defaults>
</compile_context>

<pallas_src>
import functools

import jax
import jax.numpy as jnp
from jax.experimental import pallas as pl
from jax.experimental.pallas import tpu as pltpu

LN_EPS = 1e-5  # PyTorch nn.LayerNorm default eps
LANE = 128
SUBLANE = 8


def _round_up(x, m):
    return ((x + m - 1) // m) * m


def _layernorm_no_affine(x):
    # Biased variance (divide by N), matching torch.nn.LayerNorm.
    mu = jnp.mean(x, axis=-1, keepdims=True)
    var = jnp.mean((x - mu) * (x - mu), axis=-1, keepdims=True)
    return (x - mu) * jax.lax.rsqrt(var + LN_EPS)


# Contract on the *weight's* last dim: x (TB, in) @ W^T with W stored (out, in).
_DIMS = (((1,), (1,)), ((), ()))


def actor_kernel(x_ref, w2_ref, b2_ref, w3_ref, b3_ref, w4_ref, b4_ref, out_ref):
    x = x_ref[...]

    # fc2 -> LayerNorm -> ReLU
    h = jax.lax.dot_general(x, w2_ref[...], _DIMS,
                            preferred_element_type=jnp.float32) + b2_ref[...]
    h = _layernorm_no_affine(h)
    h = jnp.maximum(h, 0.0)

    # fc3 -> LayerNorm -> ReLU
    h = jax.lax.dot_general(h, w3_ref[...], _DIMS,
                            preferred_element_type=jnp.float32) + b3_ref[...]
    h = _layernorm_no_affine(h)
    h = jnp.maximum(h, 0.0)

    # fc4 -> tanh (fc4 is pre-padded to a lane-dense output width)
    a = jax.lax.dot_general(h, w4_ref[...], _DIMS,
                            preferred_element_type=jnp.float32) + b4_ref[...]
    out_ref[...] = jnp.tanh(a)


def prepare_actor_params(params):
    """One-time (not per-call) prep: keep weights (out, in), 2-D biases,
    zero-pad the fc4 output dim up to a full 128-lane width.

    Returns (prepped_arrays_dict, action_dim). The dict contains ONLY arrays so it
    can be passed through jit without shape/metadata ints turning into tracers.
    """
    action_dim = int(params["w4"].shape[0])
    out_pad = _round_up(max(action_dim, LANE), LANE)
    w4p = jnp.pad(params["w4"], ((0, out_pad - action_dim), (0, 0)))
    b4p = jnp.pad(params["b4"], (0, out_pad - action_dim))
    prepped = {
        "w2": params["w2"], "b2": params["b2"][None, :],
        "w3": params["w3"], "b3": params["b3"][None, :],
        "w4": w4p, "b4": b4p[None, :],
    }
    return prepped, action_dim


@functools.partial(jax.jit, static_argnames=("action_dim", "tb"))
def actor_forward(state, prepped, action_dim, *, tb=512):
    """state: (B, state_dim) f32. prepped: arrays dict from prepare_actor_params."""
    B, state_dim = state.shape            # static under jit
    h1 = prepped["w2"].shape[0]           # 128
    h2 = prepped["w3"].shape[0]           # 64
    out_pad = prepped["w4"].shape[0]      # 128 (lane-padded action dim)

    # Batch tiling: pick the number of tiles from the cap `tb`, then size each tile to
    # a sublane multiple so the padded batch overshoots B as little as possible.
    n_tiles = max(1, pl.cdiv(B, tb))
    TB = _round_up(pl.cdiv(B, n_tiles), SUBLANE)
    Bp = TB * n_tiles
    if Bp != B:
        state = jnp.pad(state, ((0, Bp - B), (0, 0)))
    grid = (n_tiles,)

    # All fields are plain Python ints (shapes are static under jit).
    cost = pl.CostEstimate(
        flops=int(2 * Bp * (state_dim * h1 + h1 * h2 + h2 * out_pad)),
        transcendentals=int(Bp * (2 + out_pad)),  # 2 rsqrt + tanh-per-lane per row
        bytes_accessed=int(4 * (Bp * state_dim + Bp * out_pad
                                + h1 * state_dim + h1 + h2 * h1 + h2
                                + out_pad * h2 + out_pad)),
    )

    const = lambda i: (0, 0)  # weights/biases stay VMEM-resident across batch tiles
    out = pl.pallas_call(
        actor_kernel,
        out_shape=jax.ShapeDtypeStruct((Bp, out_pad), jnp.float32),
        grid=grid,
        in_specs=[
            pl.BlockSpec((TB, state_dim), lambda i: (i, 0)),   # state tile
            pl.BlockSpec((h1, state_dim), const),              # w2 (out, in)
            pl.BlockSpec((1, h1), const),                      # b2
            pl.BlockSpec((h2, h1), const),                     # w3
            pl.BlockSpec((1, h2), const),                      # b3
            pl.BlockSpec((out_pad, h2), const),                # w4 (padded)
            pl.BlockSpec((1, out_pad), const),                 # b4 (padded)
        ],
        out_specs=pl.BlockSpec((TB, out_pad), lambda i: (i, 0)),
        compiler_params=pltpu.CompilerParams(
            dimension_semantics=("parallel",),   # megacore split on v7x
        ),
        cost_estimate=cost,
    )(state, prepped["w2"], prepped["b2"], prepped["w3"], prepped["b3"],
      prepped["w4"], prepped["b4"])

    return out[:B, :action_dim]


def make_params(key, state_dim, action_dim):
    """Deterministic init matching the PyTorch module's __init__ distributions."""
    ks = jax.random.split(key, 6)
    # weight.data.normal_(0, 0.1)  -> N(0, 0.1)
    # bias.data.normal_(0.1)       -> N(0.1, 1.0)
    return {
        "w2": 0.1 * jax.random.normal(ks[0], (128, state_dim), jnp.float32),
        "b2": 0.1 + jax.random.normal(ks[1], (128,), jnp.float32),
        "w3": 0.1 * jax.random.normal(ks[2], (64, 128), jnp.float32),
        "b3": 0.1 + jax.random.normal(ks[3], (64,), jnp.float32),
        "w4": 0.1 * jax.random.normal(ks[4], (action_dim, 64), jnp.float32),
        "b4": 0.1 + jax.random.normal(ks[5], (action_dim,), jnp.float32),
    }


def actor_ref(state, params):
    """Pure-JAX reference for correctness checking."""
    h = state @ params["w2"].T + params["b2"]
    h = _layernorm_no_affine(h)
    h = jnp.maximum(h, 0.0)
    h = h @ params["w3"].T + params["b3"]
    h = _layernorm_no_affine(h)
    h = jnp.maximum(h, 0.0)
    a = h @ params["w4"].T + params["b4"]
    return jnp.tanh(a)


if __name__ == "__main__":
    key = jax.random.PRNGKey(0)
    k_param, k_state, k_state_big = jax.random.split(key, 3)

    state_dim = 16
    action_dim = 4
    batch = 2
    action_max = 1.0  # stored but unused by the reference forward

    params = make_params(k_param, state_dim, action_dim)
    prepped, adim = prepare_actor_params(params)

    # Tiny per-step case (B=2): kernel is launch-overhead-dominated here by design;
    # real throughput requires batching env steps before the call.
    state = jax.random.normal(k_state, (batch, state_dim), jnp.float32)
    out = jax.block_until_ready(actor_forward(state, prepped, adim))
    ref = actor_ref(state, params)
    assert out.shape == (batch, action_dim)
    assert jnp.allclose(out, ref, atol=1e-5, rtol=1e-5), "mismatch vs JAX reference (B=2)"

    # Larger batch exercising the multi-tile grid + batch padding path.
    big_batch = 600
    state_big = jax.random.normal(k_state_big, (big_batch, state_dim), jnp.float32)
    out_big = jax.block_until_ready(actor_forward(state_big, prepped, adim))
    ref_big = actor_ref(state_big, params)
    assert out_big.shape == (big_batch, action_dim)
    assert jnp.allclose(out_big, ref_big, atol=1e-5, rtol=1e-5), "mismatch vs JAX reference (B=600)"

    print("KERNEL_OK")
</pallas_src>

<mosaic_0001>
module attributes {stable_mosaic.version = 11 : i64} {
  func.func @actor_kernel(%arg0: i32, %arg1: memref<8x16xf32, #tpu.memory_space<vmem>>, %arg2: memref<128x16xf32, #tpu.memory_space<vmem>>, %arg3: memref<1x128xf32, #tpu.memory_space<vmem>>, %arg4: memref<64x128xf32, #tpu.memory_space<vmem>>, %arg5: memref<1x64xf32, #tpu.memory_space<vmem>>, %arg6: memref<128x64xf32, #tpu.memory_space<vmem>>, %arg7: memref<1x128xf32, #tpu.memory_space<vmem>>, %arg8: memref<8x128xf32, #tpu.memory_space<vmem>>) attributes {dimension_semantics = [#tpu.dimension_semantics<parallel>], iteration_bounds = array<i64: 1>, scalar_prefetch = 0 : i64, scratch_operands = 0 : i64, tpu.core_type = #tpu.core_type<tc>, window_params = [{transform_indices = @transform_0, window_bounds = array<i64: 8, 16>}, {pipeline_mode = #tpu.pipeline_mode<synchronous>, transform_indices = @transform_1, window_bounds = array<i64: 128, 16>}, {pipeline_mode = #tpu.pipeline_mode<synchronous>, transform_indices = @transform_2, window_bounds = array<i64: 1, 128>}, {pipeline_mode = #tpu.pipeline_mode<synchronous>, transform_indices = @transform_3, window_bounds = array<i64: 64, 128>}, {pipeline_mode = #tpu.pipeline_mode<synchronous>, transform_indices = @transform_4, window_bounds = array<i64: 1, 64>}, {pipeline_mode = #tpu.pipeline_mode<synchronous>, transform_indices = @transform_5, window_bounds = array<i64: 128, 64>}, {pipeline_mode = #tpu.pipeline_mode<synchronous>, transform_indices = @transform_6, window_bounds = array<i64: 1, 128>}, {transform_indices = @transform_7, window_bounds = array<i64: 8, 128>}]} {
    %c0 = arith.constant 0 : index
    %c0_0 = arith.constant 0 : index
    %0 = vector.load %arg1[%c0, %c0_0] : memref<8x16xf32, #tpu.memory_space<vmem>>, vector<8x16xf32>
    %c0_1 = arith.constant 0 : index
    %c0_2 = arith.constant 0 : index
    %1 = vector.load %arg2[%c0_1, %c0_2] : memref<128x16xf32, #tpu.memory_space<vmem>>, vector<128x16xf32>
    %cst = arith.constant dense<0.000000e+00> : vector<8x128xf32>
    %2 = tpu.matmul %0, %1, %cst {dimension_numbers = #tpu.dot_dimension_numbers<[1], [1], [0], [0], [0, 0, 1, 0], [], []>} : vector<8x16xf32>, vector<128x16xf32>, vector<8x128xf32> -> vector<8x128xf32>
    %c0_3 = arith.constant 0 : index
    %c0_4 = arith.constant 0 : index
    %3 = vector.load %arg3[%c0_3, %c0_4] : memref<1x128xf32, #tpu.memory_space<vmem>>, vector<1x128xf32>
    %4 = vector.broadcast %3 : vector<1x128xf32> to vector<8x128xf32>
    %5 = arith.addf %2, %4 : vector<8x128xf32>
    %cst_5 = arith.constant dense<0.000000e+00> : vector<8xf32>
    %6 = vector.multi_reduction <add>, %5, %cst_5 [1] : vector<8x128xf32> to vector<8xf32>
    %7 = vector.shape_cast %6 : vector<8xf32> to vector<8x1xf32>
    %cst_6 = arith.constant 1.280000e+02 : f32
    %8 = vector.broadcast %cst_6 : f32 to vector<8x1xf32>
    %9 = arith.divf %7, %8 : vector<8x1xf32>
    %10 = vector.broadcast %9 : vector<8x1xf32> to vector<8x128xf32>
    %11 = arith.subf %5, %10 : vector<8x128xf32>
    %12 = vector.broadcast %9 : vector<8x1xf32> to vector<8x128xf32>
    %13 = arith.subf %5, %12 : vector<8x128xf32>
    %14 = arith.mulf %11, %13 : vector<8x128xf32>
    %cst_7 = arith.constant dense<0.000000e+00> : vector<8xf32>
    %15 = vector.multi_reduction <add>, %14, %cst_7 [1] : vector<8x128xf32> to vector<8xf32>
    %16 = vector.shape_cast %15 : vector<8xf32> to vector<8x1xf32>
    %cst_8 = arith.constant 1.280000e+02 : f32
    %17 = vector.broadcast %cst_8 : f32 to vector<8x1xf32>
    %18 = arith.divf %16, %17 : vector<8x1xf32>
    %19 = vector.broadcast %9 : vector<8x1xf32> to vector<8x128xf32>
    %20 = arith.subf %5, %19 : vector<8x128xf32>
    %cst_9 = arith.constant 9.99999974E-6 : f32
    %21 = vector.broadcast %cst_9 : f32 to vector<8x1xf32>
    %22 = arith.addf %18, %21 : vector<8x1xf32>
    %23 = math.rsqrt %22 : vector<8x1xf32>
    %24 = vector.broadcast %23 : vector<8x1xf32> to vector<8x128xf32>
    %25 = arith.mulf %20, %24 : vector<8x128xf32>
    %cst_10 = arith.constant 0.000000e+00 : f32
    %26 = vector.broadcast %cst_10 : f32 to vector<8x128xf32>
    %27 = arith.maximumf %25, %26 : vector<8x128xf32>
    %c0_11 = arith.constant 0 : index
    %c0_12 = arith.constant 0 : index
    %28 = vector.load %arg4[%c0_11, %c0_12] : memref<64x128xf32, #tpu.memory_space<vmem>>, vector<64x128xf32>
    %cst_13 = arith.constant dense<0.000000e+00> : vector<8x64xf32>
    %29 = tpu.matmul %27, %28, %cst_13 {dimension_numbers = #tpu.dot_dimension_numbers<[1], [1], [0], [0], [0, 0, 1, 0], [], []>} : vector<8x128xf32>, vector<64x128xf32>, vector<8x64xf32> -> vector<8x64xf32>
    %c0_14 = arith.constant 0 : index
    %c0_15 = arith.constant 0 : index
    %30 = vector.load %arg5[%c0_14, %c0_15] : memref<1x64xf32, #tpu.memory_space<vmem>>, vector<1x64xf32>
    %31 = vector.broadcast %30 : vector<1x64xf32> to vector<8x64xf32>
    %32 = arith.addf %29, %31 : vector<8x64xf32>
    %cst_16 = arith.constant dense<0.000000e+00> : vector<8xf32>
    %33 = vector.multi_reduction <add>, %32, %cst_16 [1] : vector<8x64xf32> to vector<8xf32>
    %34 = vector.shape_cast %33 : vector<8xf32> to vector<8x1xf32>
    %cst_17 = arith.constant 6.400000e+01 : f32
    %35 = vector.broadcast %cst_17 : f32 to vector<8x1xf32>
    %36 = arith.divf %34, %35 : vector<8x1xf32>
    %37 = vector.broadcast %36 : vector<8x1xf32> to vector<8x64xf32>
    %38 = arith.subf %32, %37 : vector<8x64xf32>
    %39 = vector.broadcast %36 : vector<8x1xf32> to vector<8x64xf32>
    %40 = arith.subf %32, %39 : vector<8x64xf32>
    %41 = arith.mulf %38, %40 : vector<8x64xf32>
    %cst_18 = arith.constant dense<0.000000e+00> : vector<8xf32>
    %42 = vector.multi_reduction <add>, %41, %cst_18 [1] : vector<8x64xf32> to vector<8xf32>
    %43 = vector.shape_cast %42 : vector<8xf32> to vector<8x1xf32>
    %cst_19 = arith.constant 6.400000e+01 : f32
    %44 = vector.broadcast %cst_19 : f32 to vector<8x1xf32>
    %45 = arith.divf %43, %44 : vector<8x1xf32>
    %46 = vector.broadcast %36 : vector<8x1xf32> to vector<8x64xf32>
    %47 = arith.subf %32, %46 : vector<8x64xf32>
    %cst_20 = arith.constant 9.99999974E-6 : f32
    %48 = vector.broadcast %cst_20 : f32 to vector<8x1xf32>
    %49 = arith.addf %45, %48 : vector<8x1xf32>
    %50 = math.rsqrt %49 : vector<8x1xf32>
    %51 = vector.broadcast %50 : vector<8x1xf32> to vector<8x64xf32>
    %52 = arith.mulf %47, %51 : vector<8x64xf32>
    %cst_21 = arith.constant 0.000000e+00 : f32
    %53 = vector.broadcast %cst_21 : f32 to vector<8x64xf32>
    %54 = arith.maximumf %52, %53 : vector<8x64xf32>
    %c0_22 = arith.constant 0 : index
    %c0_23 = arith.constant 0 : index
    %55 = vector.load %arg6[%c0_22, %c0_23] : memref<128x64xf32, #tpu.memory_space<vmem>>, vector<128x64xf32>
    %cst_24 = arith.constant dense<0.000000e+00> : vector<8x128xf32>
    %56 = tpu.matmul %54, %55, %cst_24 {dimension_numbers = #tpu.dot_dimension_numbers<[1], [1], [0], [0], [0, 0, 1, 0], [], []>} : vector<8x64xf32>, vector<128x64xf32>, vector<8x128xf32> -> vector<8x128xf32>
    %c0_25 = arith.constant 0 : index
    %c0_26 = arith.constant 0 : index
    %57 = vector.load %arg7[%c0_25, %c0_26] : memref<1x128xf32, #tpu.memory_space<vmem>>, vector<1x128xf32>
    %58 = vector.broadcast %57 : vector<1x128xf32> to vector<8x128xf32>
    %59 = arith.addf %56, %58 : vector<8x128xf32>
    %60 = math.tanh %59 : vector<8x128xf32>
    %c0_27 = arith.constant 0 : index
    %c0_28 = arith.constant 0 : index
    %61 = vector.load %arg8[%c0_27, %c0_28] : memref<8x128xf32, #tpu.memory_space<vmem>>, vector<8x128xf32>
    tpu.vector_store %arg8[%c0_27, %c0_28], %60 {strides = array<i32>} : memref<8x128xf32, #tpu.memory_space<vmem>>, vector<8x128xf32>,
    return
  }
  func.func @transform_0(%arg0: i32) -> (i32, i32) {
    %c0_i32 = arith.constant 0 : i32
    %c0_i32_0 = arith.constant 0 : i32
    return %arg0, %c0_i32 : i32, i32
  }
  func.func @transform_1(%arg0: i32) -> (i32, i32) {
    %c0_i32 = arith.constant 0 : i32
    %c0_i32_0 = arith.constant 0 : i32
    %c0_i32_1 = arith.constant 0 : i32
    return %c0_i32, %c0_i32_0 : i32, i32
  }
  func.func @transform_2(%arg0: i32) -> (i32, i32) {
    %c0_i32 = arith.constant 0 : i32
    %c0_i32_0 = arith.constant 0 : i32
    %c0_i32_1 = arith.constant 0 : i32
    return %c0_i32, %c0_i32_0 : i32, i32
  }
  func.func @transform_3(%arg0: i32) -> (i32, i32) {
    %c0_i32 = arith.constant 0 : i32
    %c0_i32_0 = arith.constant 0 : i32
    %c0_i32_1 = arith.constant 0 : i32
    return %c0_i32, %c0_i32_0 : i32, i32
  }
  func.func @transform_4(%arg0: i32) -> (i32, i32) {
    %c0_i32 = arith.constant 0 : i32
    %c0_i32_0 = arith.constant 0 : i32
    %c0_i32_1 = arith.constant 0 : i32
    return %c0_i32, %c0_i32_0 : i32, i32
  }
  func.func @transform_5(%arg0: i32) -> (i32, i32) {
    %c0_i32 = arith.constant 0 : i32
    %c0_i32_0 = arith.constant 0 : i32
    %c0_i32_1 = arith.constant 0 : i32
    return %c0_i32, %c0_i32_0 : i32, i32
  }
  func.func @transform_6(%arg0: i32) -> (i32, i32) {
    %c0_i32 = arith.constant 0 : i32
    %c0_i32_0 = arith.constant 0 : i32
    %c0_i32_1 = arith.constant 0 : i32
    return %c0_i32, %c0_i32_0 : i32, i32
  }
  func.func @transform_7(%arg0: i32) -> (i32, i32) {
    %c0_i32 = arith.constant 0 : i32
    %c0_i32_0 = arith.constant 0 : i32
    return %arg0, %c0_i32 : i32, i32
  }
}

</mosaic_0001>

<bundles_post_ra>
// kernel: actor_forward.1
= control target key start
LH: loop header
LB: loop body
LE: loop exit
PB: predicated region body
PF: predicated region fallthrough
CT: control target
= control target key end

     0   :  { %vm50_vm0 = vcmask 130048   ;;  %v690_v0 = vmov 0.0|0.0   ;;  %vm691_vm2 = vmmov 0   ;;  %v692_v4 = vmov 0.0   ;;  %s942_s1 = inlined_call_operand.vmem [shape: f32[128,16], index: 1, kind: input, shape index: {}]   ;;  %s943_s0 = inlined_call_operand.vmem [shape: f32[8,16], index: 0, kind: input, shape index: {}]   ;;  %s944_s2 = inlined_call_operand.vmem [shape: f32[1,128], index: 2, kind: input, shape index: {}]   ;;  %s945_s3 = inlined_call_operand.vmem [shape: f32[64,128], index: 3, kind: input, shape index: {}]   ;;  %s946_s4 = inlined_call_operand.vmem [shape: f32[1,64], index: 4, kind: input, shape index: {}]   ;;  %s947_s5 = inlined_call_operand.vmem [shape: f32[128,64], index: 5, kind: input, shape index: {}]   ;;  %s948_s6 = inlined_call_operand.vmem [shape: f32[1,128], index: 6, kind: input, shape index: {}]   ;;  %s949_s7 = inlined_call_operand.vmem [shape: f32[8,128], index: 7, kind: output, shape index: {}]  }
   0x1   :  { %605 = vmatprep.subr.bf16.mxu0 %v690_v0  ;;  %v27_v1 = vld [vmem:[%s942_s1] sm:$0xff]  ;;  %v28_v2 = vld [vmem:[%s942_s1 + $0x8] sm:$0xff]  ;;  %vm742_vm1 = vmpackc.low %vm50_vm0, %vm50_vm0  ;;  %548 = vmatprep.mubr.msk.f32.mxu0 %vm691_vm2, %v692_v4  ;;  %vm270_vm3 = vcmask 523264  }
   0x2   :  { %v606_v5 = vpack.c.bf16 %v28_v2, %v27_v1  ;;  %637 = vmatprep.subr.bf16.mxu1 %v690_v0  ;;  %567 = vmatprep.mubr.msk.f32.mxu1 %vm691_vm2, %v692_v4  ;;  %v29_v6 = vld [vmem:[%s942_s1 + $0x10] sm:$0xff]  ;;  %v30_v7 = vld [vmem:[%s942_s1 + $0x18] sm:$0xff]  ;;  %v31_v9 = vld [vmem:[%s942_s1 + $0x20] sm:$0xff] }
   0x3   :  { %v610_v8 = vpack.c.bf16 %v30_v7, %v29_v6  ;;  %v32_v10 = vld [vmem:[%s942_s1 + $0x28] sm:$0xff]  ;;  %v33_v12 = vld [vmem:[%s942_s1 + $0x30] sm:$0xff]  ;;  %v34_v13 = vld [vmem:[%s942_s1 + $0x38] sm:$0xff] }
   0x4   :  { %608 = vmatpush3.bf16.xpose.msk.msra.mxu0 %vm742_vm1, %v606_v5  ;;  %v614_v11 = vpack.c.bf16 %v32_v10, %v31_v9  ;;  %v618_v14 = vpack.c.bf16 %v34_v13, %v33_v12  ;;  %v35_v15 = vld [vmem:[%s942_s1 + $0x40] sm:$0xff]  ;;  %v36_v16 = vld [vmem:[%s942_s1 + $0x48] sm:$0xff]  ;;  %v37_v18 = vld [vmem:[%s942_s1 + $0x50] sm:$0xff] }
   0x5   :  { %609 = vmatprep.subr.bf16.mxu0 %v690_v0  ;;  %v622_v17 = vpack.c.bf16 %v36_v16, %v35_v15  ;;  %v38_v19 = vld [vmem:[%s942_s1 + $0x58] sm:$0xff]  ;;  %v39_v21 = vld [vmem:[%s942_s1 + $0x60] sm:$0xff]  ;;  %v40_v22 = vld [vmem:[%s942_s1 + $0x68] sm:$0xff] }
   0x6   :  { %v626_v20 = vpack.c.bf16 %v38_v19, %v37_v18  ;;  %v630_v23 = vpack.c.bf16 %v40_v22, %v39_v21  ;;  %v41_v24 = vld [vmem:[%s942_s1 + $0x70] sm:$0xff]  ;;  %v42_v25 = vld [vmem:[%s942_s1 + $0x78] sm:$0xff]  ;;  %v26_v27 = vld [vmem:[%s943_s0] sm:$0xff] }
   0x7   :  { %v634_v26 = vpack.c.bf16 %v42_v25, %v41_v24  ;;  %v436_v28 = vld [vmem:[%s944_s2] ss:$0 sm:$0xff]  ;;  %v186_v33 = vld [vmem:[%s945_s3 + $0x8] sm:$0xff]  ;;  %v187_v35 = vld [vmem:[%s945_s3 + $0x10] sm:$0xff] }
   0x8   :  { %v185_v32 = vld [vmem:[%s945_s3] sm:$0xff]  ;;  %v188_v36 = vld [vmem:[%s945_s3 + $0x18] sm:$0xff]  ;;  %v190_v43 = vld [vmem:[%s945_s3 + $0x28] sm:$0xff] }
   0x9   :  { %v638_v34 = vpack.c.bf16 %v186_v33, %v185_v32  ;;  %v641_v37 = vpack.c.bf16 %v188_v36, %v187_v35  ;;  %v189_v42 = vld [vmem:[%s945_s3 + $0x20] sm:$0xff]  ;;  %v191_v45 = vld [vmem:[%s945_s3 + $0x30] sm:$0xff]  ;;  %v192_v46 = vld [vmem:[%s945_s3 + $0x38] sm:$0xff] }
   0xa   :  { %v644_v44 = vpack.c.bf16 %v190_v43, %v189_v42  ;;  %v647_v47 = vpack.c.bf16 %v192_v46, %v191_v45  ;;  %v454_v54 = vld [vmem:[%s946_s4] ss:$0 sm:$0xff]  ;;  %vm859_vm4 = vmpackc.low %vm270_vm3, %vm270_vm3  ;;  %v287_v61 = vld [vmem:[%s947_s5 + $0x8] sm:$0xff] }
   0xb   :  { %639 = vmatpush3.bf16.xpose.msra.mxu1 %v638_v34  ;;  %v286_v60 = vld [vmem:[%s947_s5] sm:$0xff]  ;;  %v288_v63 = vld [vmem:[%s947_s5 + $0x10] sm:$0xff]  ;;  %v289_v1 = vld [vmem:[%s947_s5 + $0x18] sm:$0xff] }
   0xc   :  { %612 = vmatpush3.bf16.xpose.msk.msra.mxu0 %vm742_vm1, %v610_v8  ;;  %640 = vmatprep.subr.bf16.mxu1 %v690_v0  ;;  %v650_v62 = vpack.c.bf16 %v287_v61, %v286_v60  ;;  %v654_v2 = vpack.c.bf16 %v289_v1, %v288_v63  ;;  %v290_v3 = vld [vmem:[%s947_s5 + $0x20] sm:$0xff]  ;;  %v292_v6 = vld [vmem:[%s947_s5 + $0x30] sm:$0xff]  ;;  %v293_v7 = vld [vmem:[%s947_s5 + $0x38] sm:$0xff] }
   0xd   :  { %613 = vmatprep.subr.bf16.mxu0 %v690_v0  ;;  %v662_v8 = vpack.c.bf16 %v293_v7, %v292_v6  ;;  %v294_v9 = vld [vmem:[%s947_s5 + $0x40] sm:$0xff]  ;;  %v295_v10 = vld [vmem:[%s947_s5 + $0x48] sm:$0xff]  ;;  %v296_v12 = vld [vmem:[%s947_s5 + $0x50] sm:$0xff] }
   0xe   :  { %v297_v13 = vld [vmem:[%s947_s5 + $0x58] sm:$0xff]  ;;  %v299_v21 = vld [vmem:[%s947_s5 + $0x68] sm:$0xff] }
   0xf   :  { %v301_v24 = vld [vmem:[%s947_s5 + $0x78] sm:$0xff] }
  0x13   :  { %642 = vmatpush3.bf16.xpose.msra.mxu1 %v641_v37 }
  0x14   :  { %616 = vmatpush3.bf16.xpose.msk.msra.mxu0 %vm742_vm1, %v614_v11  ;;  %643 = vmatprep.subr.bf16.mxu1 %v690_v0  ;;  %v666_v11 = vpack.c.bf16 %v295_v10, %v294_v9 }
  0x15   :  { %617 = vmatprep.subr.bf16.mxu0 %v690_v0 }
  0x1b   :  { %645 = vmatpush3.bf16.xpose.msra.mxu1 %v644_v44 }
  0x1c   :  { %620 = vmatpush3.bf16.xpose.msk.msra.mxu0 %vm742_vm1, %v618_v14  ;;  %646 = vmatprep.subr.bf16.mxu1 %v690_v0  ;;  %v670_v14 = vpack.c.bf16 %v297_v13, %v296_v12 }
  0x1d   :  { %621 = vmatprep.subr.bf16.mxu0 %v690_v0 }
  0x23   :  { %648 = vmatpush3.bf16.xpose.msra.mxu1 %v647_v47 }
  0x24   :  { %624 = vmatpush3.bf16.xpose.msk.msra.mxu0 %vm742_vm1, %v622_v17  ;;  %649 = vmatprep.subr.bf16.mxu1 %v690_v0 }
  0x25   :  { %625 = vmatprep.subr.bf16.mxu0 %v690_v0 }
  0x2c   :  { %628 = vmatpush3.bf16.xpose.msk.msra.mxu0 %vm742_vm1, %v626_v20  ;;  %v298_v20 = vld [vmem:[%s947_s5 + $0x60] sm:$0xff] }
  0x2d   :  { %629 = vmatprep.subr.bf16.mxu0 %v690_v0  ;;  %v674_v22 = vpack.c.bf16 %v299_v21, %v298_v20 }
  0x34   :  { %632 = vmatpush3.bf16.xpose.msk.msra.mxu0 %vm742_vm1, %v630_v23  ;;  %v300_v23 = vld [vmem:[%s947_s5 + $0x70] sm:$0xff] }
  0x35   :  { %633 = vmatprep.subr.bf16.mxu0 %v690_v0  ;;  %v678_v25 = vpack.c.bf16 %v301_v24, %v300_v23 }
  0x3c   :  { %636 = vmatpush3.bf16.xpose.msk.msra.mxu0 %vm742_vm1, %v634_v26 }
  0x43   :  { %549 = vmatmul.mubr.msk.f32.vlgmr.msra.gmra.mrb[0].mxu0 %vm50_vm0, %v26_v27 }
 0x116   :  { %v168_v29 = vpop.f32.mrb[0].mxu0 }
 0x117   :  { %v169_v30 = vadd.f32 %v436_v28, %v168_v29  ;;  %v550_v31 = vpop.f32.mrb[1].mxu0 }
 0x119   :  { %172 = vadd.xlane.f32.xlu0 %v169_v30 }
 0x1a6   :  { %v173_v38 = vpop.xlane.xlu0 %172 }
 0x1a7   :  { %v175_v39 = vmul.f32 0.0078125, %v173_v38 }
 0x1a9   :  { %v176_v40 = vsub.f32 %v169_v30, %v175_v39 }
 0x1ab   :  { %v177_v41 = vmul.f32 %v176_v40, %v176_v40 }
 0x1ad   :  { %178 = vadd.xlane.f32.xlu0 %v177_v41 }
 0x23a   :  { %v179_v48 = vpop.xlane.xlu0 %178 }
 0x23b   :  { %v180_v49 = vmul.f32 0.0078125, %v179_v48 }
 0x23d   :  { %v181_v50 = vadd.f32 1e-05, %v180_v49 }
 0x23f   :  { %684 = vrsqrt.f32 %v181_v50 }
 0x249   :  { %v685_v51 = vpop.eup %684 }
 0x24a   :  { %v183_v52 = vmul.f32 %v685_v51, %v176_v40 }
 0x24c   :  { %v184_v53 = vmax.f32 %v183_v52, 0.0 }
 0x24e   :  { %568 = vmatmul.mubr.f32.vlgmr.msra.gmra.mrb[0].mxu1 %v184_v53 }
 0x24f   :  { %602 = vmatprep.mubr.msk.f32.mxu1 %vm691_vm2, %v692_v4  ;;  %652 = vmatpush3.bf16.xpose.msk.msra.mxu1 %vm859_vm4, %v650_v62  ;;  %v291_v4 = vld [vmem:[%s947_s5 + $0x28] sm:$0xff] }
 0x250   :  { %653 = vmatprep.subr.bf16.mxu1 %v690_v0  ;;  %v658_v5 = vpack.c.bf16 %v291_v4, %v290_v3 }
 0x257   :  { %656 = vmatpush3.bf16.xpose.msk.msra.mxu1 %vm859_vm4, %v654_v2 }
 0x258   :  { %657 = vmatprep.subr.bf16.mxu1 %v690_v0 }
 0x25f   :  { %660 = vmatpush3.bf16.xpose.msk.msra.mxu1 %vm859_vm4, %v658_v5 }
 0x260   :  { %661 = vmatprep.subr.bf16.mxu1 %v690_v0 }
 0x267   :  { %664 = vmatpush3.bf16.xpose.msk.msra.mxu1 %vm859_vm4, %v662_v8 }
 0x268   :  { %665 = vmatprep.subr.bf16.mxu1 %v690_v0 }
 0x26f   :  { %668 = vmatpush3.bf16.xpose.msk.msra.mxu1 %vm859_vm4, %v666_v11 }
 0x270   :  { %669 = vmatprep.subr.bf16.mxu1 %v690_v0 }
 0x277   :  { %672 = vmatpush3.bf16.xpose.msk.msra.mxu1 %vm859_vm4, %v670_v14 }
 0x278   :  { %673 = vmatprep.subr.bf16.mxu1 %v690_v0 }
 0x27f   :  { %676 = vmatpush3.bf16.xpose.msk.msra.mxu1 %vm859_vm4, %v674_v22 }
 0x280   :  { %677 = vmatprep.subr.bf16.mxu1 %v690_v0  ;;  %v455_v0 = vld [vmem:[%s948_s6] ss:$0 sm:$0xff] }
 0x287   :  { %680 = vmatpush3.bf16.xpose.msk.msra.mxu1 %vm859_vm4, %v678_v25 }
 0x321   :  { %v266_v55 = vpop.f32.mrb[0].mxu1 }
 0x322   :  { %v267_v56 = vadd.f32 %v454_v54, %v266_v55  ;;  %v569_v57 = vpop.f32.mrb[1].mxu1 }
 0x324   :  { %v271_v58 = vsel %vm270_vm3, %v267_v56, 0.0 }
 0x325   :  { %272 = vadd.xlane.f32.xlu1 %v271_v58 }
 0x3b2   :  { %v273_v15 = vpop.xlane.xlu1 %272 }
 0x3b3   :  { %v275_v16 = vmul.f32 0.015625, %v273_v15 }
 0x3b5   :  { %v276_v17 = vsub.f32 %v267_v56, %v275_v16 }
 0x3b7   :  { %v277_v18 = vmul.f32 %v276_v17, %v276_v17 }
 0x3b9   :  { %v278_v19 = vsel %vm270_vm3, %v277_v18, 0.0 }
 0x3ba   :  { %279 = vadd.xlane.f32.xlu1 %v278_v19 }
 0x447   :  { %v280_v26 = vpop.xlane.xlu1 %279 }
 0x448   :  { %v281_v27 = vmul.f32 0.015625, %v280_v26 }
 0x44a   :  { %v282_v28 = vadd.f32 1e-05, %v281_v27 }
 0x44c   :  { %686 = vrsqrt.f32 %v282_v28 }
 0x456   :  { %v687_v29 = vpop.eup %686 }
 0x457   :  { %v284_v30 = vmul.f32 %v687_v29, %v276_v17 }
 0x459   :  { %v285_v31 = vmax.f32 %v284_v30, 0.0 }
 0x45b   :  { %603 = vmatmul.mubr.msk.f32.vlgmr.msra.gmra.mrb[2].mxu1 %vm270_vm3, %v285_v31 }
 0x52e   :  { %v426_v32 = vpop.f32.mrb[2].mxu1 }
 0x52f   :  { %v427_v33 = vadd.f32 %v455_v0, %v426_v32  ;;  %v604_v34 = vpop.f32.mrb[3].mxu1 }
 0x531   :  { %688 = vtanh.f32 %v427_v33 }
 0x53b   :  { %v689_v35 = vpop.eup %688 }
 0x53c   :  { %431 = vst [vmem:[%s949_s7] sm:$0xff] %v689_v35 }

</bundles_post_ra>
